<compile_context>
chip_gen: v7x
topology: tpu7x:2x2x1
jax: 0.10.0
libtpu: 0.0.40
codegen_flags: <defaults>
</compile_context>

<pallas_src>
import jax
import jax.numpy as jnp
from jax.experimental import pallas as pl
from jax.experimental.pallas import tpu as pltpu

LANE = 128


def _round_up(x, m):
    return (x + m - 1) // m * m


def _choose_tb(B, block_b):
    """Pick the batch tile.

    Tiny batch  -> one tile of round_up(B, 8) rows (minimal padded work).
    Large batch -> block_b, but capped at ~half the batch so the grid has
                   >= 2 tiles for v7x megacore ("parallel" axis).
    """
    b_sub = _round_up(B, 8)
    if b_sub <= 256:
        return b_sub  # launch-latency bound at this size anyway
    tb = _round_up(block_b, LANE)
    half = _round_up((_round_up(B, LANE) + 1) // 2, LANE)
    return max(LANE, min(tb, half, b_sub))


def mlp_kernel(x_ref, w1_ref, b1_ref, w2_ref, b2_ref, w3_ref, b3_ref, o_ref):
    """Fused 2-hidden-layer MLP on one batch tile.

    x_ref : (TB, IN)   f32  (cast to bf16 in-kernel for the MXU)
    w1_ref: (IN, H1P)  bf16     b1_ref: (1, H1P) f32
    w2_ref: (H1P, H2P) bf16     b2_ref: (1, H2P) f32
    w3_ref: (1, H2P)   f32      b3_ref: (1, 1)   f32
    o_ref : (TB, 1)    f32
    """
    # Hidden layer 1: Linear (bf16 MXU operands, f32 acc) + bias + ReLU in f32.
    # Dropout(0.2) is identity in eval mode.
    x = x_ref[...].astype(jnp.bfloat16)
    h = jnp.dot(x, w1_ref[...], preferred_element_type=jnp.float32)
    h = jnp.maximum(h + b1_ref[...], 0.0)

    # Hidden layer 2: same pattern; narrow to bf16 only for the MXU input.
    h = jnp.dot(h.astype(jnp.bfloat16), w2_ref[...],
                preferred_element_type=jnp.float32)
    h = jnp.maximum(h + b2_ref[...], 0.0)                     # (TB, H2P) f32

    # Output layer (out_features == 1): VPU multiply + lane reduce.  Only TB
    # scalars cross lanes; no transpose of the full f32 activation.
    o = jnp.sum(h * w3_ref[...], axis=1, keepdims=True) + b3_ref[...]
    o_ref[...] = o


def prepare_params(w1, b1, w2, b2, w3, b3):
    """One-time padding / casting of the (tiny) weights -- hoisted out of the
    per-call path.  w*: [in, out] f32 (pre-transposed); b*: [1, out] f32."""
    IN, H1 = w1.shape
    H2 = w2.shape[1]
    assert w2.shape[0] == H1 and w3.shape[0] == H2 and w3.shape[1] == 1
    H1P = _round_up(H1, LANE)
    H2P = _round_up(H2, LANE)

    w1_p = jnp.zeros((IN, H1P), jnp.bfloat16).at[:, :H1].set(w1.astype(jnp.bfloat16))
    w2_p = jnp.zeros((H1P, H2P), jnp.bfloat16).at[:H1, :H2].set(w2.astype(jnp.bfloat16))
    b1_p = jnp.zeros((1, H1P), jnp.float32).at[:, :H1].set(jnp.reshape(b1, (1, H1)))
    b2_p = jnp.zeros((1, H2P), jnp.float32).at[:, :H2].set(jnp.reshape(b2, (1, H2)))
    w3_p = jnp.zeros((1, H2P), jnp.float32).at[:, :H2].set(
        jnp.reshape(w3, (1, H2)).astype(jnp.float32))
    b3_p = jnp.reshape(jnp.asarray(b3, jnp.float32), (1, 1))
    return (w1_p, b1_p, w2_p, b2_p, w3_p, b3_p)


def mlp_forward(x, params, *, block_b=1024):
    """x: (B, IN) f32; params: output of prepare_params()."""
    w1_p, b1_p, w2_p, b2_p, w3_p, b3_p = params
    B, IN = x.shape
    IN_w, H1P = w1_p.shape
    H2P = w2_p.shape[1]
    assert IN == IN_w, (IN, IN_w)

    TB = _choose_tb(B, block_b)
    grid = (pl.cdiv(B, TB),)

    resident = lambda i: (0, 0)  # constant index_map -> weights stay in VMEM

    flops = 2 * B * (IN * H1P + H1P * H2P + H2P)
    bytes_accessed = (
        B * IN * 4 + B * 4                            # x in (f32), out (f32)
        + int(w1_p.size) * 2 + int(w2_p.size) * 2     # bf16 weights
        + (int(b1_p.size) + int(b2_p.size) + int(w3_p.size) + 1) * 4
    )

    out = pl.pallas_call(
        mlp_kernel,
        out_shape=jax.ShapeDtypeStruct((B, 1), jnp.float32),
        grid=grid,
        in_specs=[
            pl.BlockSpec((TB, IN), lambda i: (i, 0)),   # x: tiled over batch
            pl.BlockSpec((IN, H1P), resident),
            pl.BlockSpec((1, H1P), resident),
            pl.BlockSpec((H1P, H2P), resident),
            pl.BlockSpec((1, H2P), resident),
            pl.BlockSpec((1, H2P), resident),
            pl.BlockSpec((1, 1), resident),
        ],
        out_specs=pl.BlockSpec((TB, 1), lambda i: (i, 0)),
        compiler_params=pltpu.CompilerParams(
            dimension_semantics=("parallel",),  # shard batch tiles across TCs (v7x)
        ),
        cost_estimate=pl.CostEstimate(
            flops=flops, transcendentals=0, bytes_accessed=bytes_accessed),
    )(x, w1_p, b1_p, w2_p, b2_p, w3_p, b3_p)
    return out


def init_linear(key, in_features, out_features):
    """Deterministic init mirroring nn.Linear default (uniform +-1/sqrt(in)).

    Returns weight already transposed to [in, out] and bias as [1, out].
    """
    kw, kb = jax.random.split(key)
    bound = 1.0 / jnp.sqrt(jnp.float32(in_features))
    w = jax.random.uniform(kw, (in_features, out_features), jnp.float32, -bound, bound)
    b = jax.random.uniform(kb, (1, out_features), jnp.float32, -bound, bound)
    return w, b


def reference_forward_bf16(x, w1, b1, w2, b2, w3, b3):
    """Pure-JAX reference mirroring the kernel's numerics (bf16 in, f32 acc)."""
    h = jnp.dot(x.astype(jnp.bfloat16), w1.astype(jnp.bfloat16),
                preferred_element_type=jnp.float32)
    h = jnp.maximum(h + b1, 0.0)
    h = jnp.dot(h.astype(jnp.bfloat16), w2.astype(jnp.bfloat16),
                preferred_element_type=jnp.float32)
    h = jnp.maximum(h + b2, 0.0)
    return jnp.dot(h, w3, preferred_element_type=jnp.float32) + b3


def reference_forward_f32(x, w1, b1, w2, b2, w3, b3):
    h = jnp.maximum(x @ w1 + b1, 0.0)
    h = jnp.maximum(h @ w2 + b2, 0.0)
    return h @ w3 + b3


if __name__ == "__main__":
    # Shapes consistent with MLP(input_size=32, hidden_sizes=[64, 32], nn.ReLU)
    batch = 8
    input_size = 32
    hidden_sizes = [64, 32]

    key = jax.random.PRNGKey(0)
    kx, k1, k2, k3 = jax.random.split(key, 4)

    x = jax.random.normal(kx, (batch, input_size), jnp.float32)
    w1, b1 = init_linear(k1, input_size, hidden_sizes[0])
    w2, b2 = init_linear(k2, hidden_sizes[0], hidden_sizes[1])
    w3, b3 = init_linear(k3, hidden_sizes[1], 1)

    # One-time weight prep (padding + bf16 cast), hoisted out of the call path.
    params = jax.tree_util.tree_map(jax.block_until_ready,
                                    prepare_params(w1, b1, w2, b2, w3, b3))

    fwd = jax.jit(mlp_forward)
    out = jax.block_until_ready(fwd(x, params))

    ref_bf16 = reference_forward_bf16(x, w1, b1, w2, b2, w3, b3)
    ref_f32 = reference_forward_f32(x, w1, b1, w2, b2, w3, b3)

    assert out.shape == (batch, 1), out.shape
    assert jnp.allclose(out, ref_bf16, atol=1e-3, rtol=1e-3), (out, ref_bf16)
    assert jnp.allclose(out, ref_f32, atol=5e-2, rtol=5e-2), (out, ref_f32)

    print("KERNEL_OK")
</pallas_src>

<mosaic_0001>
module attributes {stable_mosaic.version = 11 : i64} {
  func.func @mlp_kernel(%arg0: i32, %arg1: memref<8x32xf32, #tpu.memory_space<vmem>>, %arg2: memref<32x128xbf16, #tpu.memory_space<vmem>>, %arg3: memref<1x128xf32, #tpu.memory_space<vmem>>, %arg4: memref<128x128xbf16, #tpu.memory_space<vmem>>, %arg5: memref<1x128xf32, #tpu.memory_space<vmem>>, %arg6: memref<1x128xf32, #tpu.memory_space<vmem>>, %arg7: memref<1x1xf32, #tpu.memory_space<vmem>>, %arg8: memref<8x1xf32, #tpu.memory_space<vmem>>) attributes {dimension_semantics = [#tpu.dimension_semantics<parallel>], iteration_bounds = array<i64: 1>, scalar_prefetch = 0 : i64, scratch_operands = 0 : i64, tpu.core_type = #tpu.core_type<tc>, window_params = [{transform_indices = @transform_0, window_bounds = array<i64: 8, 32>}, {pipeline_mode = #tpu.pipeline_mode<synchronous>, transform_indices = @transform_1, window_bounds = array<i64: 32, 128>}, {pipeline_mode = #tpu.pipeline_mode<synchronous>, transform_indices = @transform_2, window_bounds = array<i64: 1, 128>}, {pipeline_mode = #tpu.pipeline_mode<synchronous>, transform_indices = @transform_3, window_bounds = array<i64: 128, 128>}, {pipeline_mode = #tpu.pipeline_mode<synchronous>, transform_indices = @transform_4, window_bounds = array<i64: 1, 128>}, {pipeline_mode = #tpu.pipeline_mode<synchronous>, transform_indices = @transform_5, window_bounds = array<i64: 1, 128>}, {pipeline_mode = #tpu.pipeline_mode<synchronous>, transform_indices = @transform_6, window_bounds = array<i64: 1, 1>}, {transform_indices = @transform_7, window_bounds = array<i64: 8, 1>}]} {
    %c0 = arith.constant 0 : index
    %c0_0 = arith.constant 0 : index
    %0 = vector.load %arg1[%c0, %c0_0] : memref<8x32xf32, #tpu.memory_space<vmem>>, vector<8x32xf32>
    %1 = arith.truncf %0 : vector<8x32xf32> to vector<8x32xbf16>
    %c0_1 = arith.constant 0 : index
    %c0_2 = arith.constant 0 : index
    %2 = vector.load %arg2[%c0_1, %c0_2] : memref<32x128xbf16, #tpu.memory_space<vmem>>, vector<32x128xbf16>
    %cst = arith.constant dense<0.000000e+00> : vector<8x128xf32>
    %3 = tpu.matmul %1, %2, %cst {dimension_numbers = #tpu.dot_dimension_numbers<[1], [0], [0], [1], [0, 0, 1, 1], [], []>} : vector<8x32xbf16>, vector<32x128xbf16>, vector<8x128xf32> -> vector<8x128xf32>
    %c0_3 = arith.constant 0 : index
    %c0_4 = arith.constant 0 : index
    %4 = vector.load %arg3[%c0_3, %c0_4] : memref<1x128xf32, #tpu.memory_space<vmem>>, vector<1x128xf32>
    %5 = vector.broadcast %4 : vector<1x128xf32> to vector<8x128xf32>
    %6 = arith.addf %3, %5 : vector<8x128xf32>
    %cst_5 = arith.constant 0.000000e+00 : f32
    %7 = vector.broadcast %cst_5 : f32 to vector<8x128xf32>
    %8 = arith.maximumf %6, %7 : vector<8x128xf32>
    %9 = arith.truncf %8 : vector<8x128xf32> to vector<8x128xbf16>
    %c0_6 = arith.constant 0 : index
    %c0_7 = arith.constant 0 : index
    %10 = vector.load %arg4[%c0_6, %c0_7] : memref<128x128xbf16, #tpu.memory_space<vmem>>, vector<128x128xbf16>
    %cst_8 = arith.constant dense<0.000000e+00> : vector<8x128xf32>
    %11 = tpu.matmul %9, %10, %cst_8 {dimension_numbers = #tpu.dot_dimension_numbers<[1], [0], [0], [1], [0, 0, 1, 1], [], []>} : vector<8x128xbf16>, vector<128x128xbf16>, vector<8x128xf32> -> vector<8x128xf32>
    %c0_9 = arith.constant 0 : index
    %c0_10 = arith.constant 0 : index
    %12 = vector.load %arg5[%c0_9, %c0_10] : memref<1x128xf32, #tpu.memory_space<vmem>>, vector<1x128xf32>
    %13 = vector.broadcast %12 : vector<1x128xf32> to vector<8x128xf32>
    %14 = arith.addf %11, %13 : vector<8x128xf32>
    %cst_11 = arith.constant 0.000000e+00 : f32
    %15 = vector.broadcast %cst_11 : f32 to vector<8x128xf32>
    %16 = arith.maximumf %14, %15 : vector<8x128xf32>
    %c0_12 = arith.constant 0 : index
    %c0_13 = arith.constant 0 : index
    %17 = vector.load %arg6[%c0_12, %c0_13] : memref<1x128xf32, #tpu.memory_space<vmem>>, vector<1x128xf32>
    %18 = vector.broadcast %17 : vector<1x128xf32> to vector<8x128xf32>
    %19 = arith.mulf %16, %18 : vector<8x128xf32>
    %cst_14 = arith.constant dense<0.000000e+00> : vector<8xf32>
    %20 = vector.multi_reduction <add>, %19, %cst_14 [1] : vector<8x128xf32> to vector<8xf32>
    %21 = vector.shape_cast %20 : vector<8xf32> to vector<8x1xf32>
    %c0_15 = arith.constant 0 : index
    %c0_16 = arith.constant 0 : index
    %22 = vector.load %arg7[%c0_15, %c0_16] : memref<1x1xf32, #tpu.memory_space<vmem>>, vector<1x1xf32>
    %23 = vector.broadcast %22 : vector<1x1xf32> to vector<8x1xf32>
    %24 = arith.addf %21, %23 : vector<8x1xf32>
    %c0_17 = arith.constant 0 : index
    %c0_18 = arith.constant 0 : index
    %25 = vector.load %arg8[%c0_17, %c0_18] : memref<8x1xf32, #tpu.memory_space<vmem>>, vector<8x1xf32>
    tpu.vector_store %arg8[%c0_17, %c0_18], %24 {strides = array<i32>} : memref<8x1xf32, #tpu.memory_space<vmem>>, vector<8x1xf32>,
    return
  }
  func.func @transform_0(%arg0: i32) -> (i32, i32) {
    %c0_i32 = arith.constant 0 : i32
    %c0_i32_0 = arith.constant 0 : i32
    return %arg0, %c0_i32 : i32, i32
  }
  func.func @transform_1(%arg0: i32) -> (i32, i32) {
    %c0_i32 = arith.constant 0 : i32
    %c0_i32_0 = arith.constant 0 : i32
    %c0_i32_1 = arith.constant 0 : i32
    return %c0_i32, %c0_i32_0 : i32, i32
  }
  func.func @transform_2(%arg0: i32) -> (i32, i32) {
    %c0_i32 = arith.constant 0 : i32
    %c0_i32_0 = arith.constant 0 : i32
    %c0_i32_1 = arith.constant 0 : i32
    return %c0_i32, %c0_i32_0 : i32, i32
  }
  func.func @transform_3(%arg0: i32) -> (i32, i32) {
    %c0_i32 = arith.constant 0 : i32
    %c0_i32_0 = arith.constant 0 : i32
    %c0_i32_1 = arith.constant 0 : i32
    return %c0_i32, %c0_i32_0 : i32, i32
  }
  func.func @transform_4(%arg0: i32) -> (i32, i32) {
    %c0_i32 = arith.constant 0 : i32
    %c0_i32_0 = arith.constant 0 : i32
    %c0_i32_1 = arith.constant 0 : i32
    return %c0_i32, %c0_i32_0 : i32, i32
  }
  func.func @transform_5(%arg0: i32) -> (i32, i32) {
    %c0_i32 = arith.constant 0 : i32
    %c0_i32_0 = arith.constant 0 : i32
    %c0_i32_1 = arith.constant 0 : i32
    return %c0_i32, %c0_i32_0 : i32, i32
  }
  func.func @transform_6(%arg0: i32) -> (i32, i32) {
    %c0_i32 = arith.constant 0 : i32
    %c0_i32_0 = arith.constant 0 : i32
    %c0_i32_1 = arith.constant 0 : i32
    return %c0_i32, %c0_i32_0 : i32, i32
  }
  func.func @transform_7(%arg0: i32) -> (i32, i32) {
    %c0_i32 = arith.constant 0 : i32
    %c0_i32_0 = arith.constant 0 : i32
    return %arg0, %c0_i32 : i32, i32
  }
}

</mosaic_0001>

<bundles_post_ra>
// kernel: mlp_forward.1
= control target key start
LH: loop header
LB: loop body
LE: loop exit
PB: predicated region body
PF: predicated region fallthrough
CT: control target
= control target key end

     0   :  { %s523_s0 = inlined_call_operand.hbm [shape: f32[8,32], index: 0, kind: input, shape index: {}]   ;;  %s524_s1 = inlined_call_operand.hbm [shape: bf16[32,128], index: 1, kind: input, shape index: {}]   ;;  %s525_s2 = inlined_call_operand.vmem [shape: f32[1,128], index: 2, kind: input, shape index: {}]   ;;  %s526_s3 = inlined_call_operand.hbm [shape: bf16[128,128], index: 3, kind: input, shape index: {}]   ;;  %s527_s4 = inlined_call_operand.vmem [shape: f32[1,128], index: 4, kind: input, shape index: {}]   ;;  %s528_s5 = inlined_call_operand.vmem [shape: f32[1,128], index: 5, kind: input, shape index: {}]   ;;  %s529_s6 = inlined_call_operand.<no memory space> [shape: f32[1,1], index: 6, kind: input, shape index: {}]   ;;  %s530_s7 = inlined_call_operand.vmem [shape: f32[8,1], index: 7, kind: output, shape index: {}]  }
   0x1   :  { %v12_v0 = vstv %s529_s6 }
   0x2   :  { %13 = vst [vmem:[#allocation2] sm:$0x1] %v12_v0 }
   0x3   :  { %14 = vsyncpa [#allocation4], 0 }
   0x4   :  { %15 = vsyncpa [#allocation6], 0  ;;  %s419_s26 = smov [#allocation5]   ;;  %s349_s30 = scalar_lea.hbm %s524_s1, 256 }
   0x5   :  { %s31_s27 = sshll.u32 %s419_s26, 4  ;;  %p350_p0 = scmp.ne.s32.totalorder %s524_s1, %s349_s30  ;;  %s32_s27 = int_to_ptr.vmem [resolvable:$true] %s31_s27 }
   0x6   :  { %p353_p1 = scmp.lt.u32.totalorder %s349_s30, %s524_s1 }
   0x8   :  { %p355_p2 = pnand %p353_p1, %p350_p0 }
   0xa   :  { %358 = shalt.err (!%p355_p2)
}
   0xb   :  { %s359_s6 = scalar_lea.vmem %s32_s27, 256  ;;  %p364_p4 = scmp.lt.s32.totalorder %s32_s27, %s32_s27 }
   0xc   :  { %p360_p3 = scmp.ne.s32.totalorder %s32_s27, %s359_s6  ;;  %p365_p5 = scmp.lt.s32.totalorder %s359_s6, %s359_s6 }
   0xe   :  { %p366_p6 = por %p365_p5, %p364_p4 }
  0x10   :  { %p367_p7 = pnand %p366_p6, %p360_p3 }
  0x12   :  { %370 = shalt.err (!%p367_p7)
}
  0x13   :  { %s420_s12 = smov 64   ;;  %s421_s13 = smov 4  }
  0x14   :  { %37 = dma.hbm_to_vmem [thread:$0]  %s524_s1, 256, %s32_s27, [#allocation6], %s420_s12, %s420_s12, %s421_s13  }
  0x15   :  { %s422_s16 = smov [#allocation3]   ;;  %s423_s18 = smov [#allocation7]  }
  0x16   :  { %s22_s17 = sshll.u32 %s422_s16, 4  ;;  %s45_s19 = sshll.u32 %s423_s18, 4  ;;  %s23_s17 = int_to_ptr.vmem [resolvable:$true] %s22_s17  ;;  %s46_s19 = int_to_ptr.vmem [resolvable:$true] %s45_s19 }
  0x17   :  { %s371_s22 = scalar_lea.hbm %s523_s0, 128 }
  0x18   :  { %p372_p8 = scmp.ne.s32.totalorder %s523_s0, %s371_s22  ;;  %p375_p9 = scmp.lt.u32.totalorder %s371_s22, %s523_s0 }
  0x1a   :  { %p377_p10 = pnand %p375_p9, %p372_p8 }
  0x1c   :  { %380 = shalt.err (!%p377_p10)
}
  0x1d   :  { %s381_s1 = scalar_lea.vmem %s23_s17, 128  ;;  %p386_p12 = scmp.lt.s32.totalorder %s23_s17, %s23_s17 }
  0x1e   :  { %p382_p11 = scmp.ne.s32.totalorder %s23_s17, %s381_s1  ;;  %p387_p13 = scmp.lt.s32.totalorder %s381_s1, %s381_s1 }
  0x20   :  { %p388_p0 = por %p387_p13, %p386_p12 }
  0x22   :  { %p389_p1 = pnand %p388_p0, %p382_p11 }
  0x24   :  { %392 = shalt.err (!%p389_p1)
}
  0x25   :  { %25 = dma.hbm_to_vmem [thread:$0]  %s523_s0, 128, %s23_s17, [#allocation4]  }
  0x26   :  { %s393_s8 = scalar_lea.hbm %s526_s3, 1024 }
  0x27   :  { %p394_p2 = scmp.ne.s32.totalorder %s526_s3, %s393_s8  ;;  %p397_p3 = scmp.lt.u32.totalorder %s393_s8, %s526_s3 }
  0x29   :  { %p399_p4 = pnand %p397_p3, %p394_p2 }
  0x2b   :  { %402 = shalt.err (!%p399_p4)
}
  0x2c   :  { %s403_s14 = scalar_lea.vmem %s46_s19, 1024  ;;  %p408_p6 = scmp.lt.s32.totalorder %s46_s19, %s46_s19 }
  0x2d   :  { %p404_p5 = scmp.ne.s32.totalorder %s46_s19, %s403_s14  ;;  %p409_p7 = scmp.lt.s32.totalorder %s403_s14, %s403_s14 }
  0x2f   :  { %p410_p8 = por %p409_p7, %p408_p6 }
  0x31   :  { %p411_p9 = pnand %p410_p8, %p404_p5 }
  0x33   :  { %414 = shalt.err (!%p411_p9)
}
  0x34   :  { %51 = dma.hbm_to_vmem [thread:$0]  %s526_s3, 1024, %s46_s19, [#allocation6], %s420_s12, %s420_s12, %s421_s13  }
  0x35   :  { %415 = dma.done.wait [#allocation4], 128  }
  0x36   :  { %416 = vsyncadd [#allocation4], 4294967168 }
  0x37   :  { %417 = dma.done.wait [#allocation6], 1280  }
  0x38   :  { %418 = vsyncadd [#allocation6], 4294966016  ;;  %v424_v1 = vmov 0.0   ;;  %vm425_vm0 = vmmov 0   ;;  %v339_v2 = vld [vmem:[#allocation5] sm:$0xff]   ;;  %v340_v3 = vld [vmem:[#allocation5 + $0x8] sm:$0xff]  }
  0x39   :  { %304 = vmatprep.subr.bf16.mxu0 %v424_v1  ;;  %308 = vmatprep.mubr.msk.bf16.mxu0 %vm425_vm0, %v424_v1  ;;  %v68_v4 = vld [vmem:[#allocation3] sm:$0xff]  ;;  %v341_v5 = vld [vmem:[#allocation7] sm:$0xff]   ;;  %vm93_vm1 = vcmask 261120   ;;  %v343_v8 = vld [vmem:[#allocation7 + $0x10] sm:$0xff]   ;;  %vm269_vm2 = vcmask 7168  }
  0x3a   :  { %312 = vmatprep.subr.bf16.mxu1 %v424_v1  ;;  %328 = vmatprep.mubr.msk.bf16.mxu1 %vm425_vm0, %v424_v1  ;;  %v69_v6 = vpack.c.bf16 %v68_v4, %v68_v4  ;;  %v342_v7 = vld [vmem:[#allocation7 + $0x8] sm:$0xff]   ;;  %v344_v9 = vld [vmem:[#allocation7 + $0x18] sm:$0xff]   ;;  %v345_v10 = vld [vmem:[#allocation7 + $0x20] sm:$0xff]  }
  0x3b   :  { %305 = vmatpush3.bf16.msra.mxu0 %v339_v2  ;;  %313 = vmatpush3.bf16.msra.mxu1 %v341_v5  ;;  %v346_v11 = vld [vmem:[#allocation7 + $0x28] sm:$0xff]   ;;  %v347_v12 = vld [vmem:[#allocation7 + $0x30] sm:$0xff]   ;;  %v348_v13 = vld [vmem:[#allocation7 + $0x38] sm:$0xff]  }
  0x3c   :  { %306 = vmatprep.subr.bf16.mxu0 %v424_v1  ;;  %314 = vmatprep.subr.bf16.mxu1 %v424_v1  ;;  %v277_v14 = vld [vmem:[%s525_s2] ss:$0 sm:$0xff] }
  0x3d   :  { %v281_v22 = vld [vmem:[%s527_s4] ss:$0 sm:$0xff] }
  0x3e   :  { %v290_v27 = vld [vmem:[%s528_s5] ss:$0 sm:$0xff] }
  0x3f   :  { %307 = vmatpush3.bf16.msra.mxu0 %v340_v3  ;;  %315 = vmatpush3.bf16.msra.mxu1 %v342_v7  ;;  %v291_v31 = vld [vmem:[#allocation2] ss:$0 sm:$0xff] }
  0x40   :  { %316 = vmatprep.subr.bf16.mxu1 %v424_v1 }
  0x42   :  { %309 = vmatmul.mubr.msk.bf16.vlgmr.msra.gmra.mrb[0].mxu0 %vm93_vm1, %v69_v6 }
  0x43   :  { %317 = vmatpush3.bf16.msra.mxu1 %v343_v8 }
  0x44   :  { %318 = vmatprep.subr.bf16.mxu1 %v424_v1 }
  0x47   :  { %319 = vmatpush3.bf16.msra.mxu1 %v344_v9 }
  0x48   :  { %320 = vmatprep.subr.bf16.mxu1 %v424_v1 }
  0x4b   :  { %321 = vmatpush3.bf16.msra.mxu1 %v345_v10 }
  0x4c   :  { %322 = vmatprep.subr.bf16.mxu1 %v424_v1 }
  0x4f   :  { %323 = vmatpush3.bf16.msra.mxu1 %v346_v11 }
  0x50   :  { %324 = vmatprep.subr.bf16.mxu1 %v424_v1 }
  0x53   :  { %325 = vmatpush3.bf16.msra.mxu1 %v347_v12 }
  0x54   :  { %326 = vmatprep.subr.bf16.mxu1 %v424_v1 }
  0x57   :  { %327 = vmatpush3.bf16.msra.mxu1 %v348_v13 }
 0x115   :  { %v131_v15 = vpop.f32.mrb[0].mxu0 }
 0x116   :  { %v132_v16 = vadd.f32 %v277_v14, %v131_v15  ;;  %v310_v17 = vpop.f32.mrb[1].mxu0 }
 0x117   :  { %v134_v18 = vpop.f32.mrb[2].mxu0 }
 0x118   :  { %v137_v19 = vmax.f32 %v132_v16, 0.0  ;;  %v311_v20 = vpop.f32.mrb[3].mxu0 }
 0x11a   :  { %v138_v21 = vpack.c.bf16 %v137_v19, %v137_v19 }
 0x11c   :  { %329 = vmatmul.mubr.bf16.vlgmr.msra.gmra.mrb[0].mxu1 %v138_v21 }
 0x1ef   :  { %v244_v23 = vpop.f32.mrb[0].mxu1 }
 0x1f0   :  { %v245_v24 = vadd.f32 %v281_v22, %v244_v23  ;;  %v330_v25 = vpop.f32.mrb[1].mxu1 }
 0x1f1   :  { %v247_v26 = vpop.f32.mrb[2].mxu1 }
 0x1f2   :  { %v250_v28 = vmax.f32 %v245_v24, 0.0  ;;  %v331_v29 = vpop.f32.mrb[3].mxu1 }
 0x1f4   :  { %v258_v30 = vmul.f32 %v290_v27, %v250_v28 }
 0x1f6   :  { %259 = vadd.xlane.f32.xlu0 %v258_v30 }
 0x283   :  { %v260_v32 = vpop.xlane.xlu0 %259 }
 0x284   :  { %v268_v33 = vadd.f32 %v291_v31, %v260_v32 }
 0x286   :  { %270 = vst.msk [vmem:[%s530_s7] sm:$0xff] %vm269_vm2, %v268_v33 }
 0x287   :  { %275 = vsyncpa [#allocation4], 1 }
 0x288   :  { %276 = vsyncpa [#allocation6], 1 }

</bundles_post_ra>
